<compile_context>
chip_gen: v7x
topology: tpu7x:2x2x1
jax: 0.10.0
libtpu: 0.0.40
codegen_flags: <defaults>
</compile_context>

<pallas_src>
import functools
import math

import jax
import jax.numpy as jnp
from jax.experimental import pallas as pl
from jax.experimental.pallas import tpu as pltpu

_MIB = 1024 * 1024


def _round_up(x, m):
    return ((x + m - 1) // m) * m


def _sublane_multiple(dtype):
    """Minimum sublane multiple for the second-to-last dim of a tile."""
    return max(8, 32 // jnp.dtype(dtype).itemsize)   # 8 f32, 16 bf16, 32 int8/fp8


def _plan(dim, preferred_tile, align):
    """Pick (tile, padded_dim) with tile % align == 0 and padded_dim % tile == 0."""
    padded = _round_up(dim, align)
    if padded <= preferred_tile:
        return padded, padded                     # single tile along this axis
    tile = _round_up(preferred_tile, align)
    return tile, _round_up(dim, tile)


@functools.lru_cache(maxsize=None)
def _tpu_plan():
    """Per-generation tiling plan derived from the VMEM capacity.

    v5e/v6e (128 MiB VMEM, 1 TC): big contiguous weight tiles, full-row tn.
    v7x     (64 MiB VMEM, 2 TCs): smaller weight tiles, >=2 N tiles so the
    "parallel" N grid axis shards across both TensorCores.
    """
    vmem_capacity = 128 * _MIB
    try:
        vmem_capacity = int(pltpu.get_tpu_info().vmem_capacity_bytes)
    except Exception:
        pass
    if vmem_capacity >= 100 * _MIB:               # v5e / v6e class
        return dict(vmem_limit=96 * _MIB, weight_tile_bytes=16 * _MIB,
                    split_n=False, tm_pref=256)
    # v7x class (64 MiB VMEM, 2 TensorCores)
    return dict(vmem_limit=48 * _MIB, weight_tile_bytes=8 * _MIB,
                split_n=True, tm_pref=256)


def _choose_tn(out_features, split_n):
    n_pad = _round_up(out_features, 128)
    if split_n and n_pad >= 256 and (n_pad // 2) % 128 == 0:
        return n_pad // 2, n_pad                  # >=2 N tiles -> both TCs stream weights
    return n_pad, n_pad                           # full-row tn -> contiguous weight DMA


# ----------------------------- kernels ---------------------------------------

def _ridge_kernel_scratch(x_ref, w_ref, b_ref, o_ref, acc_ref):
    """One (tm, tn) output tile; accumulate over the K grid axis in f32 scratch."""
    k = pl.program_id(2)

    @pl.when(k == 0)
    def _():
        acc_ref[...] = jnp.zeros_like(acc_ref)

    acc_ref[...] += jnp.dot(x_ref[...], w_ref[...],
                            preferred_element_type=jnp.float32)

    @pl.when(k == pl.num_programs(2) - 1)
    def _():
        # Bias (kept in f32) is added exactly once, at the final K step.
        o_ref[...] = (acc_ref[...] + b_ref[...].astype(jnp.float32)).astype(o_ref.dtype)


def _ridge_kernel_acc_in_out(x_ref, w_ref, b_ref, o_ref):
    """f32 output: accumulate directly into the K-resident output block
    (saves tm*tn*4 bytes of VMEM scratch -> larger weight tiles on v7x)."""
    k = pl.program_id(2)

    @pl.when(k == 0)
    def _():
        o_ref[...] = jnp.zeros_like(o_ref)

    o_ref[...] += jnp.dot(x_ref[...], w_ref[...],
                          preferred_element_type=jnp.float32)

    @pl.when(k == pl.num_programs(2) - 1)
    def _():
        o_ref[...] += b_ref[...].astype(jnp.float32)


@functools.lru_cache(maxsize=None)
def _build_ridge_call(m_pad, k_pad, n_pad, tm, tk, tn,
                      x_dtype, w_dtype, b_dtype, out_dtype, vmem_limit):
    """Build + jit one tiled linear-layer pallas_call for fixed padded shapes."""
    x_dtype, w_dtype, b_dtype, out_dtype = (
        jnp.dtype(x_dtype), jnp.dtype(w_dtype), jnp.dtype(b_dtype), jnp.dtype(out_dtype))
    grid = (m_pad // tm, n_pad // tn, k_pad // tk)

    flops = 2 * m_pad * k_pad * n_pad
    bytes_accessed = (
        k_pad * n_pad * w_dtype.itemsize * (m_pad // tm)      # weight re-streamed per M tile
        + m_pad * k_pad * x_dtype.itemsize * (n_pad // tn)    # x re-streamed per N tile
        + m_pad * n_pad * out_dtype.itemsize
        + n_pad * b_dtype.itemsize)

    use_acc_in_out = out_dtype == jnp.dtype(jnp.float32)
    kernel = _ridge_kernel_acc_in_out if use_acc_in_out else _ridge_kernel_scratch
    scratch = [] if use_acc_in_out else [pltpu.VMEM((tm, tn), jnp.float32)]

    call = pl.pallas_call(
        kernel,
        out_shape=jax.ShapeDtypeStruct((m_pad, n_pad), out_dtype),
        grid_spec=pltpu.PrefetchScalarGridSpec(
            num_scalar_prefetch=0,
            grid=grid,
            in_specs=[
                pl.BlockSpec((tm, tk), lambda i, j, k: (i, k)),   # x tile
                pl.BlockSpec((tk, tn), lambda i, j, k: (k, j)),   # W^T tile (pre-transposed)
                pl.BlockSpec((1, tn), lambda i, j, k: (0, j)),    # f32 bias tile
            ],
            out_specs=pl.BlockSpec((tm, tn), lambda i, j, k: (i, j)),
            scratch_shapes=scratch,
        ),
        compiler_params=pltpu.CompilerParams(
            # M/N parallel (2-TC sharding on v7x, harmless elsewhere); K is the reduction.
            dimension_semantics=("parallel", "parallel", "arbitrary"),
            vmem_limit_bytes=int(vmem_limit),
        ),
        cost_estimate=pl.CostEstimate(
            flops=flops, transcendentals=0, bytes_accessed=int(bytes_accessed)),
    )
    return jax.jit(call)


def ridge_linear(x, w_t_padded, bias_padded, in_features, out_features, tk, tn, plan):
    """y = x @ W^T + b with pre-transposed, pre-padded parameters.

    x:            (..., in_features)
    w_t_padded:   (k_pad, n_pad)  -- zero-padded (in, out) weight (bf16 by default)
    bias_padded:  (1, n_pad)      -- f32
    """
    orig_shape = x.shape
    x2d = x.reshape(-1, in_features)
    m = x2d.shape[0]
    k_pad, n_pad = w_t_padded.shape

    compute_dtype = w_t_padded.dtype
    out_dtype = x.dtype

    # M tile: prefer big tiles (weight is re-streamed once per M tile); align
    # the sublane count to the compute dtype's minimum (8 f32 / 16 bf16 / 32 int8).
    tm, m_pad = _plan(m, plan["tm_pref"], _sublane_multiple(compute_dtype))

    x2d = x2d.astype(compute_dtype)
    x2d = jnp.pad(x2d, ((0, m_pad - m), (0, k_pad - in_features)))  # zero pad -> no effect

    call = _build_ridge_call(m_pad, k_pad, n_pad, tm, tk, tn,
                             jnp.dtype(compute_dtype), jnp.dtype(compute_dtype),
                             jnp.dtype(bias_padded.dtype), jnp.dtype(out_dtype),
                             plan["vmem_limit"])
    out = call(x2d, w_t_padded, bias_padded)
    out = out[:m, :out_features]
    return out.reshape(*orig_shape[:-1], out_features)


class RidgeRegression:
    """JAX/Pallas port of MindEyeV2 RidgeRegression (forward pass only).

    param_dtype defaults to bfloat16: for MindEye shapes the kernel is HBM-bound
    on the weight stream, so bf16 weights ~halve wall time; accumulation stays
    f32 and the bias is stored in f32 unconditionally.
    """

    def __init__(self, input_sizes, out_features, key, param_dtype=jnp.bfloat16):
        self.input_sizes = list(input_sizes)
        self.out_features = out_features
        self.param_dtype = jnp.dtype(param_dtype)
        self.plan = _tpu_plan()
        self.weights_t = []   # pre-transposed, padded (k_pad, n_pad), param_dtype
        self.biases_p = []    # padded (1, n_pad), always f32
        self.tiles = []       # (tk, tn) per subject

        itemsize = self.param_dtype.itemsize
        for i, in_size in enumerate(self.input_sizes):
            kw, kb = jax.random.split(jax.random.fold_in(key, i))
            bound = 1.0 / math.sqrt(in_size)          # PyTorch nn.Linear default init
            w = jax.random.uniform(kw, (out_features, in_size),
                                   minval=-bound, maxval=bound, dtype=jnp.float32)
            b = jax.random.uniform(kb, (out_features,),
                                   minval=-bound, maxval=bound, dtype=jnp.float32)

            tn_i, n_pad = _choose_tn(out_features, self.plan["split_n"])
            # K tile sized so one weight block hits the per-generation byte target.
            tk_pref = max(128, (self.plan["weight_tile_bytes"] // (tn_i * itemsize)) // 128 * 128)
            tk_i, k_pad = _plan(in_size, tk_pref, 128)

            w_t = jnp.zeros((k_pad, n_pad), dtype=self.param_dtype)
            w_t = w_t.at[:in_size, :out_features].set(w.T.astype(self.param_dtype))
            b_p = jnp.zeros((1, n_pad), dtype=jnp.float32)     # bias stays f32
            b_p = b_p.at[0, :out_features].set(b)

            self.weights_t.append(w_t)
            self.biases_p.append(b_p)
            self.tiles.append((tk_i, tn_i))

        # Unused in forward; kept for parameter parity with the PyTorch module.
        self.temp = jnp.array([5.3], dtype=jnp.float32)
        self.bias = jnp.array([-2.0], dtype=jnp.float32)

    def __call__(self, x, subj_idx):
        # TODO(synk): subject dispatch stays host-side Python, mirroring the PyTorch
        # ModuleList indexing (per-subject in_features differ, so shapes differ).
        tk, tn = self.tiles[subj_idx]
        return ridge_linear(x, self.weights_t[subj_idx], self.biases_p[subj_idx],
                            self.input_sizes[subj_idx], self.out_features,
                            tk, tn, self.plan)


if __name__ == "__main__":
    key = jax.random.PRNGKey(0)

    # Small per-subject voxel counts (input_sizes) and shared hidden size.
    input_sizes = [32, 48]
    out_features = 64
    batch, seq = 2, 3     # MindEyeV2 feeds (batch, seq, num_voxels)

    model = RidgeRegression(input_sizes, out_features, key)   # bf16 weights by default

    ok = True
    for subj_idx in range(len(input_sizes)):
        x = jax.random.normal(jax.random.fold_in(key, 100 + subj_idx),
                              (batch, seq, input_sizes[subj_idx]), dtype=jnp.float32)

        out = jax.block_until_ready(model(x, subj_idx))

        # Reference with the same casts the kernel applies (bf16 operands, f32 acc/bias).
        in_size = input_sizes[subj_idx]
        w_eff = model.weights_t[subj_idx][:in_size, :out_features].astype(jnp.float32)
        b_eff = model.biases_p[subj_idx][0, :out_features]                 # f32
        x_cast = x.astype(model.param_dtype).astype(jnp.float32)
        ref = x_cast @ w_eff + b_eff

        ok &= out.shape == (batch, seq, out_features)
        ok &= out.dtype == x.dtype
        ok &= bool(jnp.allclose(out, ref, atol=2e-3, rtol=2e-3))

    assert ok, "mismatch vs reference"
    print("KERNEL_OK")
</pallas_src>

<mosaic_0001>
module attributes {stable_mosaic.version = 11 : i64} {
  func.func @_ridge_kernel_acc_in_out(%arg0: i32, %arg1: i32, %arg2: i32, %arg3: memref<16x128xbf16, #tpu.memory_space<vmem>>, %arg4: memref<128x128xbf16, #tpu.memory_space<vmem>>, %arg5: memref<1x128xf32, #tpu.memory_space<vmem>>, %arg6: memref<16x128xf32, #tpu.memory_space<vmem>>) attributes {dimension_semantics = [#tpu.dimension_semantics<parallel>, #tpu.dimension_semantics<parallel>, #tpu.dimension_semantics<arbitrary>], iteration_bounds = array<i64: 1, 1, 1>, scalar_prefetch = 0 : i64, scratch_operands = 0 : i64, tpu.core_type = #tpu.core_type<tc>, window_params = [{transform_indices = @transform_0, window_bounds = array<i64: 16, 128>}, {transform_indices = @transform_1, window_bounds = array<i64: 128, 128>}, {transform_indices = @transform_2, window_bounds = array<i64: 1, 128>}, {transform_indices = @transform_3, window_bounds = array<i64: 16, 128>}]} {
    %c0_i32 = arith.constant 0 : i32
    %0 = arith.cmpi eq, %arg2, %c0_i32 : i32
    %1 = arith.extui %0 : i1 to i32
    %c0_i32_0 = arith.constant 0 : i32
    %2 = arith.cmpi ne, %1, %c0_i32_0 : i32
    scf.if %2 {
      %cst_10 = arith.constant 0.000000e+00 : f32
      %12 = vector.broadcast %cst_10 : f32 to vector<16x128xf32>
      %c0_11 = arith.constant 0 : index
      %c0_12 = arith.constant 0 : index
      %13 = vector.load %arg6[%c0_11, %c0_12] : memref<16x128xf32, #tpu.memory_space<vmem>>, vector<16x128xf32>
      tpu.vector_store %arg6[%c0_11, %c0_12], %12 {strides = array<i32>} : memref<16x128xf32, #tpu.memory_space<vmem>>, vector<16x128xf32>,
    } else {
    }
    %c0 = arith.constant 0 : index
    %c0_1 = arith.constant 0 : index
    %3 = vector.load %arg6[%c0, %c0_1] : memref<16x128xf32, #tpu.memory_space<vmem>>, vector<16x128xf32>
    %c0_2 = arith.constant 0 : index
    %c0_3 = arith.constant 0 : index
    %4 = vector.load %arg3[%c0_2, %c0_3] : memref<16x128xbf16, #tpu.memory_space<vmem>>, vector<16x128xbf16>
    %c0_4 = arith.constant 0 : index
    %c0_5 = arith.constant 0 : index
    %5 = vector.load %arg4[%c0_4, %c0_5] : memref<128x128xbf16, #tpu.memory_space<vmem>>, vector<128x128xbf16>
    %cst = arith.constant dense<0.000000e+00> : vector<16x128xf32>
    %6 = tpu.matmul %4, %5, %cst {dimension_numbers = #tpu.dot_dimension_numbers<[1], [0], [0], [1], [0, 0, 1, 1], [], []>} : vector<16x128xbf16>, vector<128x128xbf16>, vector<16x128xf32> -> vector<16x128xf32>
    %7 = arith.addf %3, %6 : vector<16x128xf32>
    %c0_6 = arith.constant 0 : index
    %c0_7 = arith.constant 0 : index
    %8 = vector.load %arg6[%c0_6, %c0_7] : memref<16x128xf32, #tpu.memory_space<vmem>>, vector<16x128xf32>
    tpu.vector_store %arg6[%c0_6, %c0_7], %7 {strides = array<i32>} : memref<16x128xf32, #tpu.memory_space<vmem>>, vector<16x128xf32>,
    %c0_i32_8 = arith.constant 0 : i32
    %9 = arith.cmpi eq, %arg2, %c0_i32_8 : i32
    %10 = arith.extui %9 : i1 to i32
    %c0_i32_9 = arith.constant 0 : i32
    %11 = arith.cmpi ne, %10, %c0_i32_9 : i32
    scf.if %11 {
      %c0_10 = arith.constant 0 : index
      %c0_11 = arith.constant 0 : index
      %12 = vector.load %arg6[%c0_10, %c0_11] : memref<16x128xf32, #tpu.memory_space<vmem>>, vector<16x128xf32>
      %c0_12 = arith.constant 0 : index
      %c0_13 = arith.constant 0 : index
      %13 = vector.load %arg5[%c0_12, %c0_13] : memref<1x128xf32, #tpu.memory_space<vmem>>, vector<1x128xf32>
      %14 = vector.broadcast %13 : vector<1x128xf32> to vector<16x128xf32>
      %15 = arith.addf %12, %14 : vector<16x128xf32>
      %c0_14 = arith.constant 0 : index
      %c0_15 = arith.constant 0 : index
      %16 = vector.load %arg6[%c0_14, %c0_15] : memref<16x128xf32, #tpu.memory_space<vmem>>, vector<16x128xf32>
      tpu.vector_store %arg6[%c0_14, %c0_15], %15 {strides = array<i32>} : memref<16x128xf32, #tpu.memory_space<vmem>>, vector<16x128xf32>,
    } else {
    }
    return
  }
  func.func @transform_0(%arg0: i32, %arg1: i32, %arg2: i32) -> (i32, i32) {
    %c0_i32 = arith.constant 0 : i32
    return %arg0, %arg2 : i32, i32
  }
  func.func @transform_1(%arg0: i32, %arg1: i32, %arg2: i32) -> (i32, i32) {
    %c0_i32 = arith.constant 0 : i32
    return %arg2, %arg1 : i32, i32
  }
  func.func @transform_2(%arg0: i32, %arg1: i32, %arg2: i32) -> (i32, i32) {
    %c0_i32 = arith.constant 0 : i32
    %c0_i32_0 = arith.constant 0 : i32
    return %c0_i32, %arg1 : i32, i32
  }
  func.func @transform_3(%arg0: i32, %arg1: i32, %arg2: i32) -> (i32, i32) {
    %c0_i32 = arith.constant 0 : i32
    return %arg0, %arg1 : i32, i32
  }
}

</mosaic_0001>

<bundles_post_ra>
// kernel: tpu_custom_call.1
= control target key start
LH: loop header
LB: loop body
LE: loop exit
PB: predicated region body
PF: predicated region fallthrough
CT: control target
= control target key end

     0   :  { %8 = vsyncpa [#allocation3], 0  ;;  %s451_s0 = inlined_call_operand.hbm [shape: bf16[16,128], index: 0, kind: input, shape index: {}]   ;;  %s452_s1 = inlined_call_operand.hbm [shape: bf16[128,128], index: 1, kind: input, shape index: {}]   ;;  %s453_s2 = inlined_call_operand.hbm [shape: f32[1,128], index: 2, kind: input, shape index: {}]   ;;  %s454_s3 = inlined_call_operand.hbm [shape: f32[16,128], index: 3, kind: output, shape index: {}]  }
   0x1   :  { %9 = vsyncpa [#allocation6], 0 }
   0x2   :  { %10 = vsyncpa [#allocation4], 0  ;;  %s366_s12 = smov [#allocation5]   ;;  %s367_s14 = smov [#allocation2]  }
   0x3   :  { %s28_s13 = sshll.u32 %s366_s12, 4  ;;  %s16_s15 = sshll.u32 %s367_s14, 4  ;;  %s29_s13 = int_to_ptr.vmem [resolvable:$true] %s28_s13  ;;  %s396_s15 = int_to_ptr.vmem [resolvable:$true] %s16_s15 }
   0x4   :  { %s272_s18 = scalar_lea.hbm %s452_s1, 1024 }
   0x5   :  { %p273_p0 = scmp.ne.s32.totalorder %s452_s1, %s272_s18  ;;  %p276_p1 = scmp.lt.u32.totalorder %s272_s18, %s452_s1 }
   0x7   :  { %p278_p2 = pnand %p276_p1, %p273_p0 }
   0x9   :  { %281 = shalt.err (!%p278_p2)
}
   0xa   :  { %s282_s23 = scalar_lea.vmem %s29_s13, 1024  ;;  %p287_p4 = scmp.lt.s32.totalorder %s29_s13, %s29_s13 }
   0xb   :  { %p283_p3 = scmp.ne.s32.totalorder %s29_s13, %s282_s23  ;;  %p288_p5 = scmp.lt.s32.totalorder %s282_s23, %s282_s23 }
   0xd   :  { %p289_p6 = por %p288_p5, %p287_p4 }
   0xf   :  { %p290_p7 = pnand %p289_p6, %p283_p3 }
  0x11   :  { %293 = shalt.err (!%p290_p7)
}
  0x12   :  { %s368_s24 = smov 64   ;;  %s369_s25 = smov 4  }
  0x13   :  { %34 = dma.hbm_to_vmem [thread:$0]  %s452_s1, 1024, %s29_s13, [#allocation6], %s368_s24, %s368_s24, %s369_s25  }
  0x14   :  { %s294_s30 = scalar_lea.hbm %s451_s0, 128 }
  0x15   :  { %p295_p8 = scmp.ne.s32.totalorder %s451_s0, %s294_s30  ;;  %p298_p9 = scmp.lt.u32.totalorder %s294_s30, %s451_s0 }
  0x17   :  { %p300_p10 = pnand %p298_p9, %p295_p8 }
  0x19   :  { %303 = shalt.err (!%p300_p10)
}
  0x1a   :  { %s304_s8 = scalar_lea.vmem %s396_s15, 128  ;;  %p309_p12 = scmp.lt.s32.totalorder %s396_s15, %s396_s15 }
  0x1b   :  { %p305_p11 = scmp.ne.s32.totalorder %s396_s15, %s304_s8  ;;  %p310_p13 = scmp.lt.s32.totalorder %s304_s8, %s304_s8 }
  0x1d   :  { %p311_p0 = por %p310_p13, %p309_p12 }
  0x1f   :  { %p312_p1 = pnand %p311_p0, %p305_p11 }
  0x21   :  { %315 = shalt.err (!%p312_p1)
}
  0x22   :  { %22 = dma.hbm_to_vmem [thread:$0]  %s451_s0, 128, %s396_s15, [#allocation3], %s368_s24, %s368_s24, %s369_s25  }
  0x23   :  { %s370_s10 = smov [#allocation7]   ;;  %s316_s14 = scalar_lea.hbm %s453_s2, 16 }
  0x24   :  { %s41_s11 = sshll.u32 %s370_s10, 4  ;;  %p317_p2 = scmp.ne.s32.totalorder %s453_s2, %s316_s14  ;;  %s42_s11 = int_to_ptr.vmem [resolvable:$true] %s41_s11 }
  0x25   :  { %p320_p3 = scmp.lt.u32.totalorder %s316_s14, %s453_s2 }
  0x27   :  { %p322_p4 = pnand %p320_p3, %p317_p2 }
  0x29   :  { %325 = shalt.err (!%p322_p4)
}
  0x2a   :  { %s326_s20 = scalar_lea.vmem %s42_s11, 16  ;;  %s330_s0 = scalar_lea.vmem %s42_s11, 32 }
  0x2b   :  { %p327_p5 = scmp.ne.s32.totalorder %s42_s11, %s326_s20  ;;  %p331_p6 = scmp.lt.s32.totalorder %s42_s11, %s42_s11 }
  0x2c   :  { %p332_p7 = scmp.lt.s32.totalorder %s330_s0, %s326_s20 }
  0x2e   :  { %p333_p8 = por %p332_p7, %p331_p6 }
  0x30   :  { %p334_p9 = pnand %p333_p8, %p327_p5 }
  0x32   :  { %337 = shalt.err (!%p334_p9)
}
  0x33   :  { %44 = dma.hbm_to_vmem [thread:$0]  %s453_s2, 16, %s42_s11, [#allocation6]  }
  0x34   :  { %360 = dma.done.wait [#allocation3], 128  }
  0x35   :  { %361 = vsyncadd [#allocation3], 4294967168 }
  0x36   :  { %362 = dma.done.wait [#allocation6], 1040  }
  0x37   :  { %363 = vsyncadd [#allocation6], 4294966256  ;;  %v371_v0 = vmov 0.0   ;;  %vm372_vm0 = vmmov 0   ;;  %v263_v1 = vld [vmem:[#allocation5] sm:$0xff]   ;;  %v264_v2 = vld [vmem:[#allocation5 + $0x8] sm:$0xff]  }
  0x38   :  { %233 = vmatprep.subr.bf16.mxu0 %v371_v0  ;;  %249 = vmatprep.mubr.msk.bf16.mxu0 %vm372_vm0, %v371_v0  ;;  %v265_v3 = vld [vmem:[#allocation5 + $0x10] sm:$0xff]   ;;  %v266_v4 = vld [vmem:[#allocation5 + $0x18] sm:$0xff]   ;;  %v267_v5 = vld [vmem:[#allocation5 + $0x20] sm:$0xff]   ;;  %s373_s2 = smov [#allocation8]  }
  0x39   :  { %234 = vmatpush3.bf16.msra.mxu0 %v263_v1  ;;  %v268_v6 = vld [vmem:[#allocation5 + $0x28] sm:$0xff]   ;;  %v269_v7 = vld [vmem:[#allocation5 + $0x30] sm:$0xff]   ;;  %v270_v8 = vld [vmem:[#allocation5 + $0x38] sm:$0xff]   ;;  %s201_s22 = sshll.u32 %s373_s2, 4  ;;  %s202_s22 = int_to_ptr.vmem [resolvable:$true] %s201_s22 }
  0x3a   :  { %235 = vmatprep.subr.bf16.mxu0 %v371_v0  ;;  %v271_v9 = vld [vmem:[#allocation2] sm:$0xff]   ;;  %v223_v11 = vld [vmem:[#allocation7] ss:$0 sm:$0xff]  ;;  %s338_s23 = scalar_lea.vmem %s202_s22, 256  ;;  %p343_p11 = scmp.lt.s32.totalorder %s202_s22, %s202_s22 }
  0x3b   :  { %p339_p10 = scmp.ne.s32.totalorder %s202_s22, %s338_s23  ;;  %p344_p12 = scmp.lt.s32.totalorder %s338_s23, %s338_s23 }
  0x3d   :  { %236 = vmatpush3.bf16.msra.mxu0 %v264_v2  ;;  %p345_p13 = por %p344_p12, %p343_p11 }
  0x3e   :  { %237 = vmatprep.subr.bf16.mxu0 %v371_v0 }
  0x3f   :  { %p346_p0 = pnand %p345_p13, %p339_p10 }
  0x41   :  { %238 = vmatpush3.bf16.msra.mxu0 %v265_v3 }
  0x42   :  { %239 = vmatprep.subr.bf16.mxu0 %v371_v0 }
  0x45   :  { %240 = vmatpush3.bf16.msra.mxu0 %v266_v4 }
  0x46   :  { %241 = vmatprep.subr.bf16.mxu0 %v371_v0 }
  0x49   :  { %242 = vmatpush3.bf16.msra.mxu0 %v267_v5 }
  0x4a   :  { %243 = vmatprep.subr.bf16.mxu0 %v371_v0 }
  0x4d   :  { %244 = vmatpush3.bf16.msra.mxu0 %v268_v6 }
  0x4e   :  { %245 = vmatprep.subr.bf16.mxu0 %v371_v0 }
  0x51   :  { %246 = vmatpush3.bf16.msra.mxu0 %v269_v7 }
  0x52   :  { %247 = vmatprep.subr.bf16.mxu0 %v371_v0 }
  0x55   :  { %248 = vmatpush3.bf16.msra.mxu0 %v270_v8 }
  0x58   :  { %250 = vmatmul.mubr.bf16.vlgmr.msra.gmra.mrb[0].mxu0 %v271_v9 }
 0x12b   :  { %v169_v10 = vpop.f32.mrb[0].mxu0 }
 0x12c   :  { %v251_v12 = vpop.f32.mrb[1].mxu0  ;;  %v192_v15 = vadd.f32 %v223_v11, %v169_v10 }
 0x12d   :  { %v172_v13 = vpop.f32.mrb[2].mxu0 }
 0x12e   :  { %v252_v14 = vpop.f32.mrb[3].mxu0  ;;  %v193_v16 = vadd.f32 %v223_v11, %v172_v13  ;;  %194 = vst [vmem:[#allocation8] sm:$0xff] %v192_v15 }
 0x130   :  { %195 = vst [vmem:[#allocation8 + $0x8] sm:$0xff] %v193_v16 }
 0x131   :  { %349 = shalt.err (!%p346_p0)
}
 0x132   :  { %s350_s26 = scalar_lea.hbm %s454_s3, 256 }
 0x133   :  { %p351_p1 = scmp.ne.s32.totalorder %s454_s3, %s350_s26  ;;  %p354_p2 = scmp.lt.u32.totalorder %s350_s26, %s454_s3 }
 0x135   :  { %p356_p3 = pnand %p354_p2, %p351_p1 }
 0x137   :  { %359 = shalt.err (!%p356_p3)
}
 0x138   :  { %s374_s4 = smov 128   ;;  %s375_s5 = smov 8  }
 0x139   :  { %207 = dma.vmem_to_hbm [thread:$0]  %s202_s22, 256, %s454_s3, [#allocation4], %s374_s4, %s374_s4, %s375_s5  }
 0x13a   :  { %364 = dma.done.wait [#allocation4], 256  }
 0x13b   :  { %365 = vsyncadd [#allocation4], 4294967040 }
 0x13c   :  { %211 = vsyncpa [#allocation3], 1 }
 0x13d   :  { %212 = vsyncpa [#allocation6], 1 }
 0x13e   :  { %213 = vsyncpa [#allocation4], 1 }

</bundles_post_ra>
